<compile_context>
chip_gen: v7x
topology: tpu7x:2x2x1
jax: 0.10.0
libtpu: 0.0.40
codegen_flags: <defaults>
</compile_context>

<pallas_src>
import math

import jax
import jax.numpy as jnp
from jax.experimental import pallas as pl
from jax.experimental.pallas import tpu as pltpu

EPS = 1e-5
VMEM_LIMIT = 32 * 1024 * 1024  # explicit, portable budget (v7x has 64 MiB total)


def _round_up(x, m):
    return ((x + m - 1) // m) * m


def _pick_tk(kp):
    """Largest K tile <= 512 that divides kp (kp is a multiple of 128)."""
    for tk in (512, 384, 256, 128):
        if kp % tk == 0:
            return tk
    return 128


# ----------------------------------------------------------------------------
# Fused GEMM + BN-affine (+ residual) (+ ReLU) kernel (bf16 MXU, f32 acc)
# ----------------------------------------------------------------------------
def _make_gemm_kernel(relu: bool, has_residual: bool):
    def kernel(*refs):
        if has_residual:
            a_ref, b_ref, s_ref, t_ref, r_ref, o_ref, acc_ref = refs
        else:
            a_ref, b_ref, s_ref, t_ref, o_ref, acc_ref = refs
            r_ref = None
        k = pl.program_id(2)

        @pl.when(k == 0)
        def _():
            acc_ref[...] = jnp.zeros_like(acc_ref)

        acc_ref[...] += jnp.dot(a_ref[...], b_ref[...],
                                preferred_element_type=jnp.float32)

        @pl.when(k == pl.num_programs(2) - 1)
        def _():
            y = acc_ref[...] * s_ref[...] + t_ref[...]
            if has_residual:
                y = y + r_ref[...].astype(jnp.float32)
            if relu:
                y = jnp.maximum(y, 0.0)
            o_ref[...] = y.astype(o_ref.dtype)

    return kernel


def gemm_bn_act(a, b, scale, shift, *, relu, residual=None, n_valid=None,
                out_dtype=jnp.bfloat16):
    """act((a @ b) * scale + shift (+ residual)).

    a: (M, K) activations (cast to bf16 here).
    b: (Kp, Np) weights, pre-packed/padded bf16 (Kp = round_up(K,128)).
    scale/shift: (1, Np) f32 folded BatchNorm affine.
    """
    M, K = a.shape
    Kp, Np = b.shape
    assert Kp == _round_up(K, 128)
    if n_valid is None:
        n_valid = Np

    tm = min(256, _round_up(M, 16))
    Mp = _round_up(M, tm)
    tn = 256 if Np % 256 == 0 else 128
    tk = _pick_tk(Kp)

    a = a.astype(jnp.bfloat16)
    if Mp != M or Kp != K:
        a = jnp.pad(a, ((0, Mp - M), (0, Kp - K)))

    operands = [a, b, scale, shift]
    in_specs = [
        pl.BlockSpec((tm, tk), lambda i, j, k: (i, k)),
        pl.BlockSpec((tk, tn), lambda i, j, k: (k, j)),
        pl.BlockSpec((1, tn), lambda i, j, k: (0, j)),
        pl.BlockSpec((1, tn), lambda i, j, k: (0, j)),
    ]
    if residual is not None:
        r = residual.astype(jnp.bfloat16)
        rn = r.shape[1]
        if Mp != M or Np != rn:
            r = jnp.pad(r, ((0, Mp - M), (0, Np - rn)))
        operands.append(r)
        in_specs.append(pl.BlockSpec((tm, tn), lambda i, j, k: (i, j)))

    out = pl.pallas_call(
        _make_gemm_kernel(relu, residual is not None),
        out_shape=jax.ShapeDtypeStruct((Mp, Np), out_dtype),
        grid=(Mp // tm, Np // tn, Kp // tk),
        in_specs=in_specs,
        out_specs=pl.BlockSpec((tm, tn), lambda i, j, k: (i, j)),
        scratch_shapes=[pltpu.VMEM((tm, tn), jnp.float32)],
        compiler_params=pltpu.CompilerParams(
            dimension_semantics=("parallel", "parallel", "arbitrary"),
            vmem_limit_bytes=VMEM_LIMIT),
    )(*operands)

    if Mp != M or Np != n_valid:
        out = out[:M, :n_valid]
    return out


# ----------------------------------------------------------------------------
# Convolution = im2col (bf16 glue) + fused Pallas GEMM
# ----------------------------------------------------------------------------
def _im2col(x, kh, kw, stride, pad):
    N, H, W, C = x.shape
    OH = (H + 2 * pad - kh) // stride + 1
    OW = (W + 2 * pad - kw) // stride + 1
    if kh == 1 and kw == 1 and pad == 0:
        v = x[:, ::stride, ::stride, :][:, :OH, :OW, :]
        return v.reshape(N * OH * OW, C), (N, OH, OW)
    xp = jnp.pad(x, ((0, 0), (pad, pad), (pad, pad), (0, 0)))
    cols = []
    for i in range(kh):
        for j in range(kw):
            cols.append(xp[:, i:i + (OH - 1) * stride + 1:stride,
                           j:j + (OW - 1) * stride + 1:stride, :])
    patches = jnp.stack(cols, axis=3)                 # (N, OH, OW, kh*kw, C)
    return patches.reshape(N * OH * OW, kh * kw * C), (N, OH, OW)


def conv_bn(x, p, *, relu, residual=None):
    a, (N, OH, OW) = _im2col(x, p["kh"], p["kw"], p["stride"], p["pad"])
    res2d = (residual.reshape(N * OH * OW, residual.shape[-1])
             if residual is not None else None)
    out2d = gemm_bn_act(a, p["b"], p["scale"], p["shift"], relu=relu,
                        residual=res2d, n_valid=p["cout"])
    return out2d.reshape(N, OH, OW, p["cout"])


# ----------------------------------------------------------------------------
# MaxPool 3x3 / stride 2 / pad 1  (row-tiled Pallas reduction over 9 taps)
# ----------------------------------------------------------------------------
def _make_maxpool_kernel(n_taps):
    def kernel(*refs):
        o_ref = refs[-1]
        m = refs[0][...]
        for r in refs[1:n_taps]:
            m = jnp.maximum(m, r[...])
        o_ref[...] = m
    return kernel


def max_pool_3x3_s2(x):
    N, H, W, C = x.shape
    stride, pad, k = 2, 1, 3
    OH = (H + 2 * pad - k) // stride + 1
    OW = (W + 2 * pad - k) // stride + 1
    xp = jnp.pad(x, ((0, 0), (pad, pad), (pad, pad), (0, 0)),
                 constant_values=-jnp.inf)
    views = []
    for i in range(k):
        for j in range(k):
            v = xp[:, i:i + (OH - 1) * stride + 1:stride,
                   j:j + (OW - 1) * stride + 1:stride, :]
            views.append(v.reshape(N * OH * OW, C))

    M = N * OH * OW
    rt = min(2048, _round_up(M, 16))
    Mp = _round_up(M, rt)
    if Mp != M:
        views = [jnp.pad(v, ((0, Mp - M), (0, 0))) for v in views]

    out = pl.pallas_call(
        _make_maxpool_kernel(len(views)),
        out_shape=jax.ShapeDtypeStruct((Mp, C), x.dtype),
        grid=(Mp // rt,),
        in_specs=[pl.BlockSpec((rt, C), lambda i: (i, 0))] * len(views),
        out_specs=pl.BlockSpec((rt, C), lambda i: (i, 0)),
        compiler_params=pltpu.CompilerParams(
            dimension_semantics=("parallel",),
            vmem_limit_bytes=VMEM_LIMIT),
    )(*views)
    if Mp != M:
        out = out[:M]
    return out.reshape(N, OH, OW, C)


# ----------------------------------------------------------------------------
# Global average pool (adaptive avg pool to 1x1), batch-tiled, f32 accumulate
# ----------------------------------------------------------------------------
def _avgpool_kernel(x_ref, o_ref):
    o_ref[...] = jnp.mean(x_ref[...].astype(jnp.float32), axis=1,
                          keepdims=True)


def global_avg_pool(x):
    N, H, W, C = x.shape
    x3 = x.reshape(N, H * W, C)
    out = pl.pallas_call(
        _avgpool_kernel,
        out_shape=jax.ShapeDtypeStruct((N, 1, C), jnp.float32),
        grid=(N,),
        in_specs=[pl.BlockSpec((1, H * W, C), lambda n: (n, 0, 0))],
        out_specs=pl.BlockSpec((1, 1, C), lambda n: (n, 0, 0)),
        compiler_params=pltpu.CompilerParams(
            dimension_semantics=("parallel",),
            vmem_limit_bytes=VMEM_LIMIT),
    )(x3)
    return out.reshape(N, C)


# ----------------------------------------------------------------------------
# Deterministic parameter init + one-time weight packing
# (wide_resnet50_2, num_classes=10).  Weights are transposed to (K, N),
# zero-padded to (round_up(K,128), round_up(N,128)) and cast to bf16 here,
# so forward() does NO per-call repacking / padding of weights.
# ----------------------------------------------------------------------------
def init_params(key):
    counter = [0]

    def nxt():
        counter[0] += 1
        return jax.random.fold_in(key, counter[0])

    def conv_bn_params(cout, cin, kh, kw, stride, pad):
        std = math.sqrt(2.0 / (cout * kh * kw))          # kaiming fan_out
        w = std * jax.random.normal(nxt(), (cout, cin, kh, kw), jnp.float32)
        gamma = jnp.ones((cout,), jnp.float32)
        beta = jnp.zeros((cout,), jnp.float32)
        running_mean = jnp.zeros((cout,), jnp.float32)
        running_var = jnp.ones((cout,), jnp.float32)
        scale = gamma / jnp.sqrt(running_var + EPS)
        shift = beta - running_mean * scale

        K = kh * kw * cin
        Kp = _round_up(K, 128)
        Np = _round_up(cout, 128)
        b = jnp.transpose(w, (2, 3, 1, 0)).reshape(K, cout)
        b = jnp.pad(b, ((0, Kp - K), (0, Np - cout))).astype(jnp.bfloat16)
        return {
            "b": b,
            "scale": jnp.pad(scale, (0, Np - cout)).reshape(1, Np),
            "shift": jnp.pad(shift, (0, Np - cout)).reshape(1, Np),
            "kh": kh, "kw": kw, "stride": stride, "pad": pad, "cout": cout,
        }

    params = {"conv1": conv_bn_params(64, 3, 7, 7, 2, 3)}

    layers_cfg = [(64, 3, 1), (128, 4, 2), (256, 6, 2), (512, 3, 2)]
    expansion = 4
    width_mult = 2                                       # width_per_group=128
    inplanes = 64
    layers = []
    for planes, num_blocks, stride in layers_cfg:
        width = planes * width_mult
        blocks = []
        for bi in range(num_blocks):
            s = stride if bi == 0 else 1
            out_ch = planes * expansion
            blk = {
                "conv1": conv_bn_params(width, inplanes, 1, 1, 1, 0),
                "conv2": conv_bn_params(width, width, 3, 3, s, 1),
                "conv3": conv_bn_params(out_ch, width, 1, 1, 1, 0),
                "down": (conv_bn_params(out_ch, inplanes, 1, 1, s, 0)
                         if (s != 1 or inplanes != out_ch) else None),
            }
            blocks.append(blk)
            inplanes = out_ch
        layers.append(blocks)
    params["layers"] = layers

    fc_in = 512 * expansion
    fc_w = (1.0 / math.sqrt(fc_in)) * jax.random.normal(
        nxt(), (10, fc_in), jnp.float32)
    fc_b = jnp.zeros((10,), jnp.float32)
    Np = _round_up(10, 128)
    params["fc"] = {
        "b": jnp.pad(fc_w.T, ((0, 0), (0, Np - 10))).astype(jnp.bfloat16),
        "scale": jnp.pad(jnp.ones((10,), jnp.float32),
                         (0, Np - 10)).reshape(1, Np),
        "shift": jnp.pad(fc_b, (0, Np - 10)).reshape(1, Np),
        "cout": 10,
    }
    return params


# ----------------------------------------------------------------------------
# Forward pass (matches torchvision wide_resnet50_2 forward, eval-mode BN)
# ----------------------------------------------------------------------------
def forward(params, x_nchw):
    x = jnp.transpose(x_nchw, (0, 2, 3, 1)).astype(jnp.bfloat16)  # NCHW->NHWC

    x = conv_bn(x, params["conv1"], relu=True)
    x = max_pool_3x3_s2(x)

    for blocks in params["layers"]:
        for blk in blocks:
            identity = x
            out = conv_bn(x, blk["conv1"], relu=True)
            out = conv_bn(out, blk["conv2"], relu=True)
            if blk["down"] is not None:
                identity = conv_bn(x, blk["down"], relu=False)
            # conv3 + BN + residual add + ReLU fused in one GEMM epilogue
            x = conv_bn(out, blk["conv3"], relu=True, residual=identity)

    pooled = global_avg_pool(x)                                   # (N, 2048)
    fc = params["fc"]
    logits = gemm_bn_act(pooled.astype(jnp.bfloat16), fc["b"], fc["scale"],
                         fc["shift"], relu=False, n_valid=fc["cout"],
                         out_dtype=jnp.float32)                   # (N, 10)
    return logits


if __name__ == "__main__":
    key = jax.random.PRNGKey(0)
    params = init_params(jax.random.fold_in(key, 1))
    x = jax.random.normal(jax.random.fold_in(key, 2), (2, 3, 16, 16),
                          jnp.float32)
    logits = forward(params, x)
    logits = jax.block_until_ready(logits)
    assert logits.shape == (2, 10)
    assert bool(jnp.all(jnp.isfinite(logits)))
    print("KERNEL_OK")
</pallas_src>

<mosaic_0001>
module attributes {stable_mosaic.version = 11 : i64} {
  func.func @kernel(%arg0: i32, %arg1: i32, %arg2: i32, %arg3: memref<128x256xbf16, #tpu.memory_space<vmem>>, %arg4: memref<256x128xbf16, #tpu.memory_space<vmem>>, %arg5: memref<1x128xf32, #tpu.memory_space<vmem>>, %arg6: memref<1x128xf32, #tpu.memory_space<vmem>>, %arg7: memref<128x128xbf16, #tpu.memory_space<vmem>>, %arg8: memref<128x128xf32, #tpu.memory_space<vmem>>) attributes {dimension_semantics = [#tpu.dimension_semantics<parallel>, #tpu.dimension_semantics<parallel>, #tpu.dimension_semantics<arbitrary>], iteration_bounds = array<i64: 1, 1, 1>, scalar_prefetch = 0 : i64, scratch_operands = 1 : i64, tpu.core_type = #tpu.core_type<tc>, window_params = [{transform_indices = @transform_0, window_bounds = array<i64: 128, 256>}, {transform_indices = @transform_1, window_bounds = array<i64: 256, 128>}, {transform_indices = @transform_2, window_bounds = array<i64: 1, 128>}, {transform_indices = @transform_3, window_bounds = array<i64: 1, 128>}, {transform_indices = @transform_4, window_bounds = array<i64: 128, 128>}]} {
    %c0_i32 = arith.constant 0 : i32
    %0 = arith.cmpi eq, %arg2, %c0_i32 : i32
    %1 = arith.extui %0 : i1 to i32
    %c0_i32_0 = arith.constant 0 : i32
    %2 = arith.cmpi ne, %1, %c0_i32_0 : i32
    scf.if %2 {
      %cst_10 = arith.constant 0.000000e+00 : f32
      %12 = vector.broadcast %cst_10 : f32 to vector<128x128xf32>
      %c0_11 = arith.constant 0 : index
      %c0_12 = arith.constant 0 : index
      %13 = vector.load %arg8[%c0_11, %c0_12] : memref<128x128xf32, #tpu.memory_space<vmem>>, vector<128x128xf32>
      tpu.vector_store %arg8[%c0_11, %c0_12], %12 {strides = array<i32>} : memref<128x128xf32, #tpu.memory_space<vmem>>, vector<128x128xf32>,
    } else {
    }
    %c0 = arith.constant 0 : index
    %c0_1 = arith.constant 0 : index
    %3 = vector.load %arg8[%c0, %c0_1] : memref<128x128xf32, #tpu.memory_space<vmem>>, vector<128x128xf32>
    %c0_2 = arith.constant 0 : index
    %c0_3 = arith.constant 0 : index
    %4 = vector.load %arg3[%c0_2, %c0_3] : memref<128x256xbf16, #tpu.memory_space<vmem>>, vector<128x256xbf16>
    %c0_4 = arith.constant 0 : index
    %c0_5 = arith.constant 0 : index
    %5 = vector.load %arg4[%c0_4, %c0_5] : memref<256x128xbf16, #tpu.memory_space<vmem>>, vector<256x128xbf16>
    %cst = arith.constant dense<0.000000e+00> : vector<128x128xf32>
    %6 = tpu.matmul %4, %5, %cst {dimension_numbers = #tpu.dot_dimension_numbers<[1], [0], [0], [1], [0, 0, 1, 1], [], []>} : vector<128x256xbf16>, vector<256x128xbf16>, vector<128x128xf32> -> vector<128x128xf32>
    %7 = arith.addf %3, %6 : vector<128x128xf32>
    %c0_6 = arith.constant 0 : index
    %c0_7 = arith.constant 0 : index
    %8 = vector.load %arg8[%c0_6, %c0_7] : memref<128x128xf32, #tpu.memory_space<vmem>>, vector<128x128xf32>
    tpu.vector_store %arg8[%c0_6, %c0_7], %7 {strides = array<i32>} : memref<128x128xf32, #tpu.memory_space<vmem>>, vector<128x128xf32>,
    %c0_i32_8 = arith.constant 0 : i32
    %9 = arith.cmpi eq, %arg2, %c0_i32_8 : i32
    %10 = arith.extui %9 : i1 to i32
    %c0_i32_9 = arith.constant 0 : i32
    %11 = arith.cmpi ne, %10, %c0_i32_9 : i32
    scf.if %11 {
      %c0_10 = arith.constant 0 : index
      %c0_11 = arith.constant 0 : index
      %12 = vector.load %arg8[%c0_10, %c0_11] : memref<128x128xf32, #tpu.memory_space<vmem>>, vector<128x128xf32>
      %c0_12 = arith.constant 0 : index
      %c0_13 = arith.constant 0 : index
      %13 = vector.load %arg5[%c0_12, %c0_13] : memref<1x128xf32, #tpu.memory_space<vmem>>, vector<1x128xf32>
      %14 = vector.broadcast %13 : vector<1x128xf32> to vector<128x128xf32>
      %15 = arith.mulf %12, %14 : vector<128x128xf32>
      %c0_14 = arith.constant 0 : index
      %c0_15 = arith.constant 0 : index
      %16 = vector.load %arg6[%c0_14, %c0_15] : memref<1x128xf32, #tpu.memory_space<vmem>>, vector<1x128xf32>
      %17 = vector.broadcast %16 : vector<1x128xf32> to vector<128x128xf32>
      %18 = arith.addf %15, %17 : vector<128x128xf32>
      %cst_16 = arith.constant 0.000000e+00 : f32
      %19 = vector.broadcast %cst_16 : f32 to vector<128x128xf32>
      %20 = arith.maximumf %18, %19 : vector<128x128xf32>
      %21 = arith.truncf %20 : vector<128x128xf32> to vector<128x128xbf16>
      %c0_17 = arith.constant 0 : index
      %c0_18 = arith.constant 0 : index
      %22 = vector.load %arg7[%c0_17, %c0_18] : memref<128x128xbf16, #tpu.memory_space<vmem>>, vector<128x128xbf16>
      tpu.vector_store %arg7[%c0_17, %c0_18], %21 {strides = array<i32>} : memref<128x128xbf16, #tpu.memory_space<vmem>>, vector<128x128xbf16>,
    } else {
    }
    return
  }
  func.func @transform_0(%arg0: i32, %arg1: i32, %arg2: i32) -> (i32, i32) {
    %c0_i32 = arith.constant 0 : i32
    return %arg0, %arg2 : i32, i32
  }
  func.func @transform_1(%arg0: i32, %arg1: i32, %arg2: i32) -> (i32, i32) {
    %c0_i32 = arith.constant 0 : i32
    return %arg2, %arg1 : i32, i32
  }
  func.func @transform_2(%arg0: i32, %arg1: i32, %arg2: i32) -> (i32, i32) {
    %c0_i32 = arith.constant 0 : i32
    %c0_i32_0 = arith.constant 0 : i32
    return %c0_i32, %arg1 : i32, i32
  }
  func.func @transform_3(%arg0: i32, %arg1: i32, %arg2: i32) -> (i32, i32) {
    %c0_i32 = arith.constant 0 : i32
    %c0_i32_0 = arith.constant 0 : i32
    return %c0_i32, %arg1 : i32, i32
  }
  func.func @transform_4(%arg0: i32, %arg1: i32, %arg2: i32) -> (i32, i32) {
    %c0_i32 = arith.constant 0 : i32
    return %arg0, %arg1 : i32, i32
  }
}

</mosaic_0001>

<bundles_post_ra>
// kernel: tpu_custom_call.1
= control target key start
LH: loop header
LB: loop body
LE: loop exit
PB: predicated region body
PF: predicated region fallthrough
CT: control target
= control target key end

     0   :  { %9 = vsyncpa [#allocation4], 0  ;;  %s1043_s0 = inlined_call_operand.hbm [shape: bf16[128,256], index: 0, kind: input, shape index: {}]   ;;  %s1044_s1 = inlined_call_operand.hbm [shape: bf16[256,128], index: 1, kind: input, shape index: {}]   ;;  %s1045_s2 = inlined_call_operand.vmem [shape: f32[1,128], index: 2, kind: input, shape index: {}]   ;;  %s1046_s3 = inlined_call_operand.vmem [shape: f32[1,128], index: 3, kind: input, shape index: {}]   ;;  %s1047_s4 = inlined_call_operand.hbm [shape: bf16[128,128], index: 4, kind: output, shape index: {}]  }
   0x1   :  { %10 = vsyncpa [#allocation7], 0 }
   0x2   :  { %11 = vsyncpa [#allocation5], 0  ;;  %s927_s15 = smov [#allocation3]   ;;  %s855_s19 = scalar_lea.hbm %s1043_s0, 2048 }
   0x3   :  { %s17_s16 = sshll.u32 %s927_s15, 4  ;;  %p856_p0 = scmp.ne.s32.totalorder %s1043_s0, %s855_s19  ;;  %s18_s16 = int_to_ptr.vmem [resolvable:$true] %s17_s16 }
   0x4   :  { %p859_p1 = scmp.lt.u32.totalorder %s855_s19, %s1043_s0 }
   0x6   :  { %p861_p2 = pnand %p859_p1, %p856_p0 }
   0x8   :  { %864 = shalt.err (!%p861_p2)
}
   0x9   :  { %s865_s24 = scalar_lea.vmem %s18_s16, 2048  ;;  %p870_p4 = scmp.lt.s32.totalorder %s18_s16, %s18_s16 }
   0xa   :  { %p866_p3 = scmp.ne.s32.totalorder %s18_s16, %s865_s24  ;;  %p871_p5 = scmp.lt.s32.totalorder %s865_s24, %s865_s24 }
   0xc   :  { %p872_p6 = por %p871_p5, %p870_p4 }
   0xe   :  { %p873_p7 = pnand %p872_p6, %p866_p3 }
  0x10   :  { %876 = shalt.err (!%p873_p7)
}
  0x11   :  { %s928_s25 = smov 128   ;;  %s929_s26 = smov 8  }
  0x12   :  { %23 = dma.hbm_to_vmem [thread:$0]  %s1043_s0, 2048, %s18_s16, [#allocation4], %s928_s25, %s928_s25, %s929_s26  }
  0x13   :  { %s930_s29 = smov [#allocation6]   ;;  %s877_s7 = scalar_lea.hbm %s1044_s1, 2048 }
  0x14   :  { %s29_s30 = sshll.u32 %s930_s29, 4  ;;  %p878_p8 = scmp.ne.s32.totalorder %s1044_s1, %s877_s7  ;;  %s30_s30 = int_to_ptr.vmem [resolvable:$true] %s29_s30 }
  0x15   :  { %p881_p9 = scmp.lt.u32.totalorder %s877_s7, %s1044_s1 }
  0x17   :  { %p883_p10 = pnand %p881_p9, %p878_p8 }
  0x19   :  { %886 = shalt.err (!%p883_p10)
}
  0x1a   :  { %s887_s12 = scalar_lea.vmem %s30_s30, 2048  ;;  %p892_p12 = scmp.lt.s32.totalorder %s30_s30, %s30_s30 }
  0x1b   :  { %p888_p11 = scmp.ne.s32.totalorder %s30_s30, %s887_s12  ;;  %p893_p13 = scmp.lt.s32.totalorder %s887_s12, %s887_s12 }
  0x1d   :  { %p894_p0 = por %p893_p13, %p892_p12 }
  0x1f   :  { %p895_p1 = pnand %p894_p0, %p888_p11 }
  0x21   :  { %898 = shalt.err (!%p895_p1)
}
  0x22   :  { %s931_s0 = smov 64   ;;  %s932_s13 = smov 4  }
  0x23   :  { %35 = dma.hbm_to_vmem [thread:$0]  %s1044_s1, 2048, %s30_s30, [#allocation7], %s931_s0, %s931_s0, %s932_s13  }
  0x24   :  { %921 = dma.done.wait [#allocation4], 2048  }
  0x25   :  { %922 = vsyncadd [#allocation4], 4294965248 }
  0x26   :  { %923 = dma.done.wait [#allocation7], 2048  }
  0x27   :  { %924 = vsyncadd [#allocation7], 4294965248  ;;  %v815_v0 = vld [vmem:[#allocation6 + $0x40] sm:$0xff]   ;;  %v817_v2 = vld [vmem:[#allocation6 + $0x48] sm:$0xff]  }
  0x28   :  { %v816_v1 = vld [vmem:[#allocation6] sm:$0xff]   ;;  %728 = vmatprep.subr.bf16.mxu0 %v815_v0  ;;  %792 = vmatprep.subr.bf16.mxu1 %v815_v0  ;;  %v818_v3 = vld [vmem:[#allocation6 + $0x8] sm:$0xff]   ;;  %v819_v4 = vld [vmem:[#allocation6 + $0x50] sm:$0xff]  }
  0x29   :  { %729 = vmatpush3.bf16.msra.mxu0 %v816_v1  ;;  %800 = vmatpush3.bf16.msra.mxu1 %v816_v1  ;;  %v820_v5 = vld [vmem:[#allocation6 + $0x10] sm:$0xff]   ;;  %v821_v6 = vld [vmem:[#allocation6 + $0x58] sm:$0xff]   ;;  %v823_v8 = vld [vmem:[#allocation6 + $0x60] sm:$0xff]  }
  0x2a   :  { %730 = vmatprep.subr.bf16.mxu0 %v817_v2  ;;  %793 = vmatprep.subr.bf16.mxu1 %v817_v2  ;;  %v822_v7 = vld [vmem:[#allocation6 + $0x18] sm:$0xff]   ;;  %v824_v9 = vld [vmem:[#allocation6 + $0x20] sm:$0xff]   ;;  %v825_v10 = vld [vmem:[#allocation6 + $0x68] sm:$0xff]  }
  0x2b   :  { %v833_v11 = vld [vmem:[#allocation3 + $0x4] ss:$8 sps:$4 sm:$0xff]   ;;  %v827_v14 = vld [vmem:[#allocation6 + $0x70] sm:$0xff]   ;;  %v829_v16 = vld [vmem:[#allocation6 + $0x78] sm:$0xff]  }
  0x2c   :  { %v836_v12 = vld [vmem:[#allocation3 + $0x44] ss:$8 sps:$4 sm:$0xff]   ;;  %339 = vmatprep.mubr.bf16.mxu0 %v833_v11  ;;  %v828_v15 = vld [vmem:[#allocation6 + $0x30] sm:$0xff]   ;;  %v830_v17 = vld [vmem:[#allocation6 + $0x38] sm:$0xff]  }
  0x2d   :  { %731 = vmatpush3.bf16.msra.mxu0 %v818_v3  ;;  %801 = vmatpush3.bf16.msra.mxu1 %v818_v3  ;;  %v826_v13 = vld [vmem:[#allocation6 + $0x28] sm:$0xff]   ;;  %v837_v20 = vld [vmem:[#allocation3 + $0x14] ss:$8 sps:$4 sm:$0xff]   ;;  %v841_v22 = vld [vmem:[#allocation3 + $0x10] ss:$8 sps:$4 sm:$0xff]  }
  0x2e   :  { %732 = vmatprep.subr.bf16.mxu0 %v819_v4  ;;  %794 = vmatprep.subr.bf16.mxu1 %v819_v4  ;;  %v831_v18 = vld [vmem:[#allocation3] ss:$8 sps:$4 sm:$0xff]   ;;  %v839_v21 = vld [vmem:[#allocation3 + $0x54] ss:$8 sps:$4 sm:$0xff]   ;;  %v842_v23 = vld [vmem:[#allocation3 + $0x50] ss:$8 sps:$4 sm:$0xff]  }
  0x2f   :  { %371 = vmatprep.mubr.bf16.mxu1 %v836_v12  ;;  %v834_v19 = vld [vmem:[#allocation3 + $0x40] ss:$8 sps:$4 sm:$0xff]   ;;  %v843_v24 = vld [vmem:[#allocation3 + $0x24] ss:$8 sps:$4 sm:$0xff]   ;;  %v849_v28 = vld [vmem:[#allocation3 + $0x34] ss:$8 sps:$4 sm:$0xff]  }
  0x30   :  { %v845_v25 = vld [vmem:[#allocation3 + $0x64] ss:$8 sps:$4 sm:$0xff]   ;;  %v847_v26 = vld [vmem:[#allocation3 + $0x20] ss:$8 sps:$4 sm:$0xff]   ;;  %v851_v29 = vld [vmem:[#allocation3 + $0x74] ss:$8 sps:$4 sm:$0xff]  }
  0x31   :  { %733 = vmatpush3.bf16.msra.mxu0 %v820_v5  ;;  %802 = vmatpush3.bf16.msra.mxu1 %v820_v5  ;;  %v848_v27 = vld [vmem:[#allocation3 + $0x60] ss:$8 sps:$4 sm:$0xff]   ;;  %v853_v30 = vld [vmem:[#allocation3 + $0x30] ss:$8 sps:$4 sm:$0xff]  }
  0x32   :  { %734 = vmatprep.subr.bf16.mxu0 %v821_v6  ;;  %795 = vmatprep.subr.bf16.mxu1 %v821_v6  ;;  %v854_v31 = vld [vmem:[#allocation3 + $0x70] ss:$8 sps:$4 sm:$0xff]   ;;  %v989_v35 = vld [vmem:[%s1045_s2] ss:$0 sm:$0xff]  ;;  %s933_s2 = smov [#allocation8]  }
  0x33   :  { %v994_v41 = vld [vmem:[%s1046_s3] ss:$0 sm:$0xff]  ;;  %s602_s3 = sshll.u32 %s933_s2, 4  ;;  %s603_s3 = int_to_ptr.vmem [resolvable:$true] %s602_s3 }
  0x34   :  { %s899_s19 = scalar_lea.vmem %s603_s3, 1024  ;;  %p904_p3 = scmp.lt.s32.totalorder %s603_s3, %s603_s3 }
  0x35   :  { %735 = vmatpush3.bf16.msra.mxu0 %v822_v7  ;;  %803 = vmatpush3.bf16.msra.mxu1 %v822_v7  ;;  %p900_p2 = scmp.ne.s32.totalorder %s603_s3, %s899_s19  ;;  %p905_p4 = scmp.lt.s32.totalorder %s899_s19, %s899_s19 }
  0x36   :  { %736 = vmatprep.subr.bf16.mxu0 %v823_v8  ;;  %796 = vmatprep.subr.bf16.mxu1 %v823_v8 }
  0x37   :  { %p906_p5 = por %p905_p4, %p904_p3 }
  0x39   :  { %737 = vmatpush3.bf16.msra.mxu0 %v824_v9  ;;  %804 = vmatpush3.bf16.msra.mxu1 %v824_v9  ;;  %p907_p6 = pnand %p906_p5, %p900_p2 }
  0x3a   :  { %738 = vmatprep.subr.bf16.mxu0 %v825_v10  ;;  %797 = vmatprep.subr.bf16.mxu1 %v825_v10 }
  0x3d   :  { %739 = vmatpush3.bf16.msra.mxu0 %v826_v13  ;;  %805 = vmatpush3.bf16.msra.mxu1 %v826_v13 }
  0x3e   :  { %740 = vmatprep.subr.bf16.mxu0 %v827_v14  ;;  %798 = vmatprep.subr.bf16.mxu1 %v827_v14 }
  0x41   :  { %741 = vmatpush3.bf16.msra.mxu0 %v828_v15  ;;  %806 = vmatpush3.bf16.msra.mxu1 %v828_v15 }
  0x42   :  { %742 = vmatprep.subr.bf16.mxu0 %v829_v16  ;;  %799 = vmatprep.subr.bf16.mxu1 %v829_v16 }
  0x45   :  { %743 = vmatpush3.bf16.msra.mxu0 %v830_v17  ;;  %807 = vmatpush3.bf16.msra.mxu1 %v830_v17 }
  0x48   :  { %340 = vmatmul.mubr.bf16.vlgmr.msra.gmra.mrb[0].mxu0 %v831_v18  ;;  %372 = vmatmul.mubr.bf16.vlgmr.msra.gmra.mrb[0].mxu1 %v834_v19 }
  0x49   :  { %347 = vmatprep.mubr.bf16.mxu0 %v837_v20  ;;  %379 = vmatprep.mubr.bf16.mxu1 %v839_v21 }
  0x50   :  { %348 = vmatmul.mubr.bf16.gmra.mrb[4].mxu0 %v841_v22  ;;  %380 = vmatmul.mubr.bf16.gmra.mrb[4].mxu1 %v842_v23 }
  0x51   :  { %355 = vmatprep.mubr.bf16.mxu0 %v843_v24  ;;  %387 = vmatprep.mubr.bf16.mxu1 %v845_v25 }
  0x58   :  { %356 = vmatmul.mubr.bf16.gmra.mrb[8].mxu0 %v847_v26  ;;  %388 = vmatmul.mubr.bf16.gmra.mrb[8].mxu1 %v848_v27 }
  0x59   :  { %363 = vmatprep.mubr.bf16.mxu0 %v849_v28  ;;  %395 = vmatprep.mubr.bf16.mxu1 %v851_v29 }
  0x60   :  { %364 = vmatmul.mubr.bf16.gmra.mrb[12].mxu0 %v853_v30  ;;  %396 = vmatmul.mubr.bf16.gmra.mrb[12].mxu1 %v854_v31 }
 0x11b   :  { %v744_v32 = vpop.f32.mrb[0].mxu0  ;;  %v768_v33 = vpop.f32.mrb[0].mxu1 }
 0x11c   :  { %v745_v34 = vpop.f32.mrb[1].mxu0  ;;  %v769_v36 = vpop.f32.mrb[1].mxu1 }
 0x11d   :  { %v746_v37 = vadd.f32 %v745_v34, %v744_v32  ;;  %v770_v38 = vadd.f32 %v769_v36, %v768_v33  ;;  %v747_v39 = vpop.f32.mrb[2].mxu0  ;;  %v771_v40 = vpop.f32.mrb[2].mxu1 }
 0x11e   :  { %v748_v42 = vpop.f32.mrb[3].mxu0  ;;  %v772_v43 = vpop.f32.mrb[3].mxu1 }
 0x11f   :  { %v462_v44 = vmul.f32 %v746_v37, %v989_v35  ;;  %v470_v45 = vmul.f32 %v770_v38, %v989_v35  ;;  %v749_v46 = vadd.f32 %v748_v42, %v747_v39  ;;  %v773_v47 = vadd.f32 %v772_v43, %v771_v40 }
 0x121   :  { %v485_v48 = vadd.f32 %v994_v41, %v462_v44  ;;  %v493_v49 = vadd.f32 %v994_v41, %v470_v45  ;;  %v463_v50 = vmul.f32 %v749_v46, %v989_v35  ;;  %v471_v51 = vmul.f32 %v773_v47, %v989_v35 }
 0x123   :  { %v486_v52 = vadd.f32 %v994_v41, %v463_v50  ;;  %v494_v53 = vadd.f32 %v994_v41, %v471_v51  ;;  %v750_v54 = vpop.f32.mrb[4].mxu0  ;;  %v774_v55 = vpop.f32.mrb[4].mxu1  ;;  %v501_v56 = vmax.f32 %v485_v48, 0.0  ;;  %v509_v57 = vmax.f32 %v493_v49, 0.0 }
 0x124   :  { %v751_v58 = vpop.f32.mrb[5].mxu0  ;;  %v775_v59 = vpop.f32.mrb[5].mxu1 }
 0x125   :  { %v502_v60 = vmax.f32 %v486_v52, 0.0  ;;  %v510_v61 = vmax.f32 %v494_v53, 0.0  ;;  %v752_v62 = vadd.f32 %v751_v58, %v750_v54  ;;  %v776_v63 = vadd.f32 %v775_v59, %v774_v55  ;;  %v753_v0 = vpop.f32.mrb[6].mxu0  ;;  %v777_v1 = vpop.f32.mrb[6].mxu1 }
 0x126   :  { %v754_v2 = vpop.f32.mrb[7].mxu0  ;;  %v778_v3 = vpop.f32.mrb[7].mxu1 }
 0x127   :  { %v684_v4 = vpack.c.bf16 %v502_v60, %v501_v56  ;;  %v704_v5 = vpack.c.bf16 %v510_v61, %v509_v57  ;;  %v464_v6 = vmul.f32 %v752_v62, %v989_v35  ;;  %v472_v7 = vmul.f32 %v776_v63, %v989_v35 }
 0x128   :  { %v755_v8 = vadd.f32 %v754_v2, %v753_v0  ;;  %v779_v9 = vadd.f32 %v778_v3, %v777_v1 }
 0x129   :  { %685 = vst [vmem:[#allocation8] sm:$0xff] %v684_v4   ;;  %724 = vst [vmem:[#allocation8 + $0x20] sm:$0xff] %v704_v5   ;;  %v487_v10 = vadd.f32 %v994_v41, %v464_v6  ;;  %v495_v11 = vadd.f32 %v994_v41, %v472_v7 }
 0x12a   :  { %v465_v12 = vmul.f32 %v755_v8, %v989_v35  ;;  %v473_v13 = vmul.f32 %v779_v9, %v989_v35 }
 0x12b   :  { %v756_v14 = vpop.f32.mrb[8].mxu0  ;;  %v780_v15 = vpop.f32.mrb[8].mxu1  ;;  %v503_v24 = vmax.f32 %v487_v10, 0.0  ;;  %v511_v25 = vmax.f32 %v495_v11, 0.0 }
 0x12c   :  { %v488_v16 = vadd.f32 %v994_v41, %v465_v12  ;;  %v496_v17 = vadd.f32 %v994_v41, %v473_v13  ;;  %v757_v18 = vpop.f32.mrb[9].mxu0  ;;  %v781_v19 = vpop.f32.mrb[9].mxu1 }
 0x12d   :  { %v758_v20 = vadd.f32 %v757_v18, %v756_v14  ;;  %v782_v21 = vadd.f32 %v781_v19, %v780_v15  ;;  %v759_v22 = vpop.f32.mrb[10].mxu0  ;;  %v783_v23 = vpop.f32.mrb[10].mxu1 }
 0x12e   :  { %v504_v26 = vmax.f32 %v488_v16, 0.0  ;;  %v512_v27 = vmax.f32 %v496_v17, 0.0  ;;  %v760_v28 = vpop.f32.mrb[11].mxu0  ;;  %v784_v29 = vpop.f32.mrb[11].mxu1 }
 0x12f   :  { %v466_v30 = vmul.f32 %v758_v20, %v989_v35  ;;  %v474_v31 = vmul.f32 %v782_v21, %v989_v35  ;;  %v761_v32 = vadd.f32 %v760_v28, %v759_v22  ;;  %v785_v33 = vadd.f32 %v784_v29, %v783_v23 }
 0x130   :  { %v689_v34 = vpack.c.bf16 %v504_v26, %v503_v24  ;;  %v709_v36 = vpack.c.bf16 %v512_v27, %v511_v25 }
 0x131   :  { %v489_v37 = vadd.f32 %v994_v41, %v466_v30  ;;  %v497_v38 = vadd.f32 %v994_v41, %v474_v31  ;;  %v467_v39 = vmul.f32 %v761_v32, %v989_v35  ;;  %v475_v40 = vmul.f32 %v785_v33, %v989_v35 }
 0x132   :  { %721 = vst [vmem:[#allocation8 + $0x8] sm:$0xff] %v689_v34   ;;  %725 = vst [vmem:[#allocation8 + $0x28] sm:$0xff] %v709_v36  }
 0x133   :  { %v490_v42 = vadd.f32 %v994_v41, %v467_v39  ;;  %v498_v43 = vadd.f32 %v994_v41, %v475_v40  ;;  %v762_v44 = vpop.f32.mrb[12].mxu0  ;;  %v786_v45 = vpop.f32.mrb[12].mxu1  ;;  %v505_v46 = vmax.f32 %v489_v37, 0.0  ;;  %v513_v47 = vmax.f32 %v497_v38, 0.0 }
 0x134   :  { %v763_v48 = vpop.f32.mrb[13].mxu0  ;;  %v787_v49 = vpop.f32.mrb[13].mxu1 }
 0x135   :  { %v506_v50 = vmax.f32 %v490_v42, 0.0  ;;  %v514_v51 = vmax.f32 %v498_v43, 0.0  ;;  %v764_v52 = vadd.f32 %v763_v48, %v762_v44  ;;  %v788_v53 = vadd.f32 %v787_v49, %v786_v45  ;;  %v765_v54 = vpop.f32.mrb[14].mxu0  ;;  %v789_v55 = vpop.f32.mrb[14].mxu1 }
 0x136   :  { %v766_v56 = vpop.f32.mrb[15].mxu0  ;;  %v790_v57 = vpop.f32.mrb[15].mxu1 }
 0x137   :  { %v694_v58 = vpack.c.bf16 %v506_v50, %v505_v46  ;;  %v714_v59 = vpack.c.bf16 %v514_v51, %v513_v47  ;;  %v468_v60 = vmul.f32 %v764_v52, %v989_v35  ;;  %v476_v61 = vmul.f32 %v788_v53, %v989_v35 }
 0x138   :  { %v767_v62 = vadd.f32 %v766_v56, %v765_v54  ;;  %v791_v63 = vadd.f32 %v790_v57, %v789_v55 }
 0x139   :  { %722 = vst [vmem:[#allocation8 + $0x10] sm:$0xff] %v694_v58   ;;  %726 = vst [vmem:[#allocation8 + $0x30] sm:$0xff] %v714_v59   ;;  %v491_v0 = vadd.f32 %v994_v41, %v468_v60  ;;  %v499_v1 = vadd.f32 %v994_v41, %v476_v61 }
 0x13a   :  { %v469_v2 = vmul.f32 %v767_v62, %v989_v35  ;;  %v477_v3 = vmul.f32 %v791_v63, %v989_v35 }
 0x13b   :  { %v507_v6 = vmax.f32 %v491_v0, 0.0  ;;  %v515_v7 = vmax.f32 %v499_v1, 0.0 }
 0x13c   :  { %v492_v4 = vadd.f32 %v994_v41, %v469_v2  ;;  %v500_v5 = vadd.f32 %v994_v41, %v477_v3 }
 0x13e   :  { %v508_v8 = vmax.f32 %v492_v4, 0.0  ;;  %v516_v9 = vmax.f32 %v500_v5, 0.0 }
 0x140   :  { %v699_v10 = vpack.c.bf16 %v508_v8, %v507_v6  ;;  %v719_v11 = vpack.c.bf16 %v516_v9, %v515_v7 }
 0x142   :  { %723 = vst [vmem:[#allocation8 + $0x18] sm:$0xff] %v699_v10   ;;  %727 = vst [vmem:[#allocation8 + $0x38] sm:$0xff] %v719_v11  }
 0x143   :  { %910 = shalt.err (!%p907_p6)
}
 0x144   :  { %s911_s22 = scalar_lea.hbm %s1047_s4, 1024 }
 0x145   :  { %p912_p7 = scmp.ne.s32.totalorder %s1047_s4, %s911_s22  ;;  %p915_p8 = scmp.lt.u32.totalorder %s911_s22, %s1047_s4 }
 0x147   :  { %p917_p9 = pnand %p915_p8, %p912_p7 }
 0x149   :  { %920 = shalt.err (!%p917_p9)
}
 0x14a   :  { %608 = dma.vmem_to_hbm [thread:$0]  %s603_s3, 1024, %s1047_s4, [#allocation5], %s931_s0, %s931_s0, %s932_s13  }
 0x14b   :  { %925 = dma.done.wait [#allocation5], 1024  }
 0x14c   :  { %926 = vsyncadd [#allocation5], 4294966272 }
 0x14d   :  { %612 = vsyncpa [#allocation4], 1 }
 0x14e   :  { %613 = vsyncpa [#allocation7], 1 }
 0x14f   :  { %614 = vsyncpa [#allocation5], 1 }

</bundles_post_ra>
